<compile_context>
chip_gen: v7x
topology: tpu7x:2x2x1
jax: 0.10.0
libtpu: 0.0.40
codegen_flags: <defaults>
</compile_context>

<pallas_src>
import jax
import jax.numpy as jnp
from jax.experimental import pallas as pl
from jax.experimental.pallas import tpu as pltpu


def _attention_kernel(z_ref, w_ref, out_ref, beta_ref):
    # z_ref   : (TB, N, D)  input batch tile (kept in its native dtype)
    # w_ref   : (1, D)      projection weight (shared across all grid steps)
    # out_ref : (TB, D)     pooled output tile
    # beta_ref: (TB, N)     attention weights, lane-dense along N
    z = z_ref[...]                                    # (TB, N, D) native dtype
    w = w_ref[...].astype(z.dtype)                    # (1, D), cast once (tiny)

    # logits[b, n] = <z[b, n, :], w>  -- multiply in native dtype, widen only
    # for the lane-axis reduction (f32 accumulation, no full-tile f32 copy).
    logits = jnp.sum((z * w[None, :, :]).astype(jnp.float32), axis=-1)  # (TB, N)

    # Numerically stable softmax over N (lane axis), all-f32.
    m = jnp.max(logits, axis=-1, keepdims=True)       # (TB, 1)
    e = jnp.exp(logits - m)                           # (TB, N)
    denom = jnp.sum(e, axis=-1, keepdims=True)        # (TB, 1)
    beta = e * (1.0 / denom)                          # exact recip on tiny denom

    # out[b, :] = sum_n beta[b, n] * z[b, n, :]
    # VPU broadcast-multiply + sublane (axis=1) reduction, f32 accumulation;
    # full 8x128 vector width, no per-batch MXU operand reload.
    prod = (beta.astype(z.dtype)[:, :, None] * z).astype(jnp.float32)   # (TB, N, D)
    out = jnp.sum(prod, axis=1)                       # (TB, D) f32

    beta_ref[...] = beta.astype(beta_ref.dtype)
    out_ref[...] = out.astype(out_ref.dtype)


def _round_up(x, m):
    return ((x + m - 1) // m) * m


def _choose_tiling(B, N, D, itemsize):
    """Pick the batch-tile size TB and a VMEM limit appropriate for this TPU."""
    try:
        vmem_cap = int(pltpu.get_tpu_info().vmem_capacity_bytes)
    except Exception:
        vmem_cap = 64 * 1024 * 1024            # conservative fallback (v7x/TC)

    # Lane/sublane-padded VMEM footprint of one batch row of z.
    d_pad = _round_up(max(D, 1), 128)
    n_pad = _round_up(max(N, 1), 8)
    row_bytes = n_pad * d_pad * itemsize

    # Mem-bound sweet spot: ~2 MiB of z per step (measured 85%+ of HBM roofline
    # at 1-4 MiB tiles, per-step overhead ~0.35 us) -> long grid, real
    # double-buffered overlap, and VMEM headroom for f32 temporaries even on
    # v7x's 64 MiB part.
    tb = max(1, (2 * 1024 * 1024) // row_bytes)

    # Keep at least ~8 grid steps when the batch allows (>=4 per TC on v7x).
    if B >= 8:
        tb = min(tb, max(1, B // 8))
    tb = min(tb, B)
    if tb >= 8:
        tb = (tb // 8) * 8                     # sublane-aligned batch tile
    tb = max(tb, 1)

    # Prefer an even number of (roughly equal) grid steps so v7x's two
    # TensorCores stay balanced under "parallel" dimension semantics.
    steps = pl.cdiv(B, tb)
    if steps > 2 and steps % 2 == 1:
        tb_alt = pl.cdiv(B, steps + 1)
        if tb_alt >= 8:
            tb_alt = (tb_alt // 8) * 8
        tb = max(1, min(tb, tb_alt))

    # VMEM limit from actual padded usage (+ ~30% headroom), capped by capacity.
    tb_pad = _round_up(tb, 8)
    z_bufs = 2 * tb * n_pad * d_pad * itemsize                 # double-buffered z
    out_bufs = 2 * tb_pad * (d_pad + _round_up(N, 128)) * itemsize
    f32_temps = 3 * tb * n_pad * d_pad * 4                     # in-kernel temps
    usage = z_bufs + out_bufs + f32_temps + (2 << 20)
    vmem_limit = max(24 << 20, int(usage * 1.3))
    vmem_limit = min(vmem_limit, vmem_cap * 3 // 4)
    return int(tb), int(vmem_limit)


def attention_forward(z, weight):
    """z: (B, N, D), weight: (1, D) (PyTorch Linear weight layout).
    Returns (out (B, D), beta (B, N, 1))."""
    B, N, D = z.shape
    itemsize = jnp.dtype(z.dtype).itemsize
    tb, vmem_limit = _choose_tiling(B, N, D, itemsize)
    grid = (pl.cdiv(B, tb),)

    # TODO(synk): if a single (N, D) row slab no longer fits VMEM (huge N*D,
    # worst on v7x's 64 MiB), add a second "arbitrary" grid axis over N with an
    # online-softmax accumulator; one slab per batch row is assumed here.
    # TODO(synk): for D (or N) far below 128 the lane padding wastes VMEM/vregs;
    # a packed/folded feature layout would fix that but changes the interface.

    out_shapes = (
        jax.ShapeDtypeStruct((B, D), z.dtype),   # pooled output
        jax.ShapeDtypeStruct((B, N), z.dtype),   # beta, lane-dense along N
    )
    grid_spec = pltpu.PrefetchScalarGridSpec(
        num_scalar_prefetch=0,
        grid=grid,
        in_specs=[
            pl.BlockSpec((tb, N, D), lambda b: (b, 0, 0)),   # z batch tile
            pl.BlockSpec((1, D), lambda b: (0, 0)),          # shared weight
        ],
        out_specs=[
            pl.BlockSpec((tb, D), lambda b: (b, 0)),         # out tile
            pl.BlockSpec((tb, N), lambda b: (b, 0)),         # beta tile
        ],
    )
    out, beta2d = pl.pallas_call(
        _attention_kernel,
        out_shape=out_shapes,
        grid_spec=grid_spec,
        compiler_params=pltpu.CompilerParams(
            dimension_semantics=("parallel",),
            vmem_limit_bytes=vmem_limit,
        ),
    )(z, weight)
    # Restore the module's (B, N, 1) beta shape outside the kernel.
    return out, beta2d[:, :, None]


def _reference(z, weight):
    logits = jnp.einsum("bnd,od->bno", z, weight)          # (B, N, 1)
    beta = jax.nn.softmax(logits, axis=1)
    out = jnp.sum(beta * z, axis=1)
    return out, beta


if __name__ == "__main__":
    key = jax.random.PRNGKey(0)
    B, N, D = 2, 8, 32  # batch, seq/nodes, hidden (in_size)

    kz, kw = jax.random.split(key)
    z = jax.random.normal(kz, (B, N, D), dtype=jnp.float32)
    # nn.Linear(in_size, 1, bias=False) weight has shape (1, in_size)
    bound = 1.0 / (D ** 0.5)
    weight = jax.random.uniform(kw, (1, D), dtype=jnp.float32,
                                minval=-bound, maxval=bound)

    out, beta = attention_forward(z, weight)
    jax.block_until_ready((out, beta))

    ref_out, ref_beta = _reference(z, weight)
    assert out.shape == (B, D) and beta.shape == (B, N, 1)
    assert jnp.allclose(out, ref_out, atol=1e-4, rtol=1e-4)
    assert jnp.allclose(beta, ref_beta, atol=1e-4, rtol=1e-4)

    print("KERNEL_OK")
</pallas_src>

<mosaic_0001>
module attributes {stable_mosaic.version = 11 : i64} {
  func.func @_attention_kernel(%arg0: i32, %arg1: memref<2x8x32xf32, #tpu.memory_space<vmem>>, %arg2: memref<1x32xf32, #tpu.memory_space<vmem>>, %arg3: memref<2x32xf32, #tpu.memory_space<vmem>>, %arg4: memref<2x8xf32, #tpu.memory_space<vmem>>) attributes {dimension_semantics = [#tpu.dimension_semantics<parallel>], iteration_bounds = array<i64: 1>, scalar_prefetch = 0 : i64, scratch_operands = 0 : i64, tpu.core_type = #tpu.core_type<tc>, window_params = [{transform_indices = @transform_0, window_bounds = array<i64: 2, 8, 32>}, {pipeline_mode = #tpu.pipeline_mode<synchronous>, transform_indices = @transform_1, window_bounds = array<i64: 1, 32>}, {transform_indices = @transform_2, window_bounds = array<i64: 2, 32>}, {transform_indices = @transform_3, window_bounds = array<i64: 2, 8>}]} {
    %c0 = arith.constant 0 : index
    %c0_0 = arith.constant 0 : index
    %c0_1 = arith.constant 0 : index
    %0 = vector.load %arg1[%c0, %c0_0, %c0_1] : memref<2x8x32xf32, #tpu.memory_space<vmem>>, vector<2x8x32xf32>
    %c0_2 = arith.constant 0 : index
    %c0_3 = arith.constant 0 : index
    %1 = vector.load %arg2[%c0_2, %c0_3] : memref<1x32xf32, #tpu.memory_space<vmem>>, vector<1x32xf32>
    %2 = vector.shape_cast %1 : vector<1x32xf32> to vector<1x1x32xf32>
    %3 = vector.broadcast %2 : vector<1x1x32xf32> to vector<2x8x32xf32>
    %4 = arith.mulf %0, %3 : vector<2x8x32xf32>
    %cst = arith.constant dense<0.000000e+00> : vector<2x8xf32>
    %5 = vector.multi_reduction <add>, %4, %cst [2] : vector<2x8x32xf32> to vector<2x8xf32>
    %cst_4 = arith.constant dense<0xFF800000> : vector<2xf32>
    %6 = vector.multi_reduction <maximumf>, %5, %cst_4 [1] : vector<2x8xf32> to vector<2xf32>
    %7 = vector.shape_cast %6 : vector<2xf32> to vector<2x1xf32>
    %8 = vector.broadcast %7 : vector<2x1xf32> to vector<2x8xf32>
    %9 = arith.subf %5, %8 : vector<2x8xf32>
    %10 = math.exp %9 : vector<2x8xf32>
    %cst_5 = arith.constant dense<0.000000e+00> : vector<2xf32>
    %11 = vector.multi_reduction <add>, %10, %cst_5 [1] : vector<2x8xf32> to vector<2xf32>
    %12 = vector.shape_cast %11 : vector<2xf32> to vector<2x1xf32>
    %cst_6 = arith.constant 1.000000e+00 : f32
    %13 = vector.broadcast %cst_6 : f32 to vector<2x1xf32>
    %14 = arith.divf %13, %12 : vector<2x1xf32>
    %15 = vector.broadcast %14 : vector<2x1xf32> to vector<2x8xf32>
    %16 = arith.mulf %10, %15 : vector<2x8xf32>
    %17 = vector.shape_cast %16 : vector<2x8xf32> to vector<2x8x1xf32>
    %18 = vector.broadcast %17 : vector<2x8x1xf32> to vector<2x8x32xf32>
    %19 = arith.mulf %18, %0 : vector<2x8x32xf32>
    %cst_7 = arith.constant dense<0.000000e+00> : vector<2x32xf32>
    %20 = vector.multi_reduction <add>, %19, %cst_7 [1] : vector<2x8x32xf32> to vector<2x32xf32>
    %c0_8 = arith.constant 0 : index
    %c0_9 = arith.constant 0 : index
    %21 = vector.load %arg4[%c0_8, %c0_9] : memref<2x8xf32, #tpu.memory_space<vmem>>, vector<2x8xf32>
    tpu.vector_store %arg4[%c0_8, %c0_9], %16 {strides = array<i32>} : memref<2x8xf32, #tpu.memory_space<vmem>>, vector<2x8xf32>,
    %c0_10 = arith.constant 0 : index
    %c0_11 = arith.constant 0 : index
    %22 = vector.load %arg3[%c0_10, %c0_11] : memref<2x32xf32, #tpu.memory_space<vmem>>, vector<2x32xf32>
    tpu.vector_store %arg3[%c0_10, %c0_11], %20 {strides = array<i32>} : memref<2x32xf32, #tpu.memory_space<vmem>>, vector<2x32xf32>,
    return
  }
  func.func @transform_0(%arg0: i32) -> (i32, i32, i32) {
    %c0_i32 = arith.constant 0 : i32
    %c0_i32_0 = arith.constant 0 : i32
    %c0_i32_1 = arith.constant 0 : i32
    return %arg0, %c0_i32, %c0_i32_0 : i32, i32, i32
  }
  func.func @transform_1(%arg0: i32) -> (i32, i32) {
    %c0_i32 = arith.constant 0 : i32
    %c0_i32_0 = arith.constant 0 : i32
    %c0_i32_1 = arith.constant 0 : i32
    return %c0_i32, %c0_i32_0 : i32, i32
  }
  func.func @transform_2(%arg0: i32) -> (i32, i32) {
    %c0_i32 = arith.constant 0 : i32
    %c0_i32_0 = arith.constant 0 : i32
    return %arg0, %c0_i32 : i32, i32
  }
  func.func @transform_3(%arg0: i32) -> (i32, i32) {
    %c0_i32 = arith.constant 0 : i32
    %c0_i32_0 = arith.constant 0 : i32
    return %arg0, %c0_i32 : i32, i32
  }
}

</mosaic_0001>

<bundles_post_ra>
// kernel: tpu_custom_call.1
= control target key start
LH: loop header
LB: loop body
LE: loop exit
PB: predicated region body
PF: predicated region fallthrough
CT: control target
= control target key end

     0   :  { %9 = vsyncpa [#allocation3], 0  ;;  %s354_s0 = inlined_call_operand.hbm [shape: f32[2,8,32], index: 0, kind: input, shape index: {}]   ;;  %s355_s1 = inlined_call_operand.vmem [shape: f32[1,32], index: 1, kind: input, shape index: {}]   ;;  %s356_s2 = inlined_call_operand.hbm [shape: f32[2,32], index: 2, kind: output, shape index: {0}]   ;;  %s357_s3 = inlined_call_operand.hbm [shape: f32[2,8], index: 3, kind: output, shape index: {1}]  }
   0x1   :  { %10 = vsyncpa [#allocation4], 0 }
   0x2   :  { %11 = vsyncpa [#allocation7], 0  ;;  %s278_s12 = smov [#allocation2]   ;;  %s206_s16 = scalar_lea.hbm %s354_s0, 256 }
   0x3   :  { %s17_s13 = sshll.u32 %s278_s12, 4  ;;  %p207_p0 = scmp.ne.s32.totalorder %s354_s0, %s206_s16  ;;  %s18_s13 = int_to_ptr.vmem [resolvable:$true] %s17_s13 }
   0x4   :  { %p210_p1 = scmp.lt.u32.totalorder %s206_s16, %s354_s0 }
   0x6   :  { %p212_p2 = pnand %p210_p1, %p207_p0 }
   0x8   :  { %215 = shalt.err (!%p212_p2)
}
   0x9   :  { %s216_s21 = scalar_lea.vmem %s18_s13, 256  ;;  %p221_p4 = scmp.lt.s32.totalorder %s18_s13, %s18_s13 }
   0xa   :  { %p217_p3 = scmp.ne.s32.totalorder %s18_s13, %s216_s21  ;;  %p222_p5 = scmp.lt.s32.totalorder %s216_s21, %s216_s21 }
   0xc   :  { %p223_p6 = por %p222_p5, %p221_p4 }
   0xe   :  { %p224_p7 = pnand %p223_p6, %p217_p3 }
  0x10   :  { %227 = shalt.err (!%p224_p7)
}
  0x11   :  { %s279_s22 = smov 128   ;;  %s280_s23 = smov 8  }
  0x12   :  { %23 = dma.hbm_to_vmem [thread:$0]  %s354_s0, 256, %s18_s13, [#allocation3], %s279_s22, %s279_s22, %s280_s23  }
  0x13   :  { %272 = dma.done.wait [#allocation3], 256  }
  0x14   :  { %273 = vsyncadd [#allocation3], 4294967040  ;;  %v29_v0 = vld [vmem:[#allocation2] sm:$0xff]  ;;  %vm40_vm0 = vcmask 261120   ;;  %v30_v2 = vld [vmem:[#allocation2 + $0x8] sm:$0xff]  ;;  %v49_v7 = vlaneseq  ;;  %vm59_vm1 = vcmask 1041409  }
  0x15   :  { %v191_v1 = vld [vmem:[%s355_s1] ss:$0 sm:$0xff]  ;;  %vm62_vm2 = vcmask 58368   ;;  %v281_v17 = vmov 0   ;;  %s282_s0 = smov [#allocation6]  }
  0x16   :  { %v38_v3 = vmul.f32 %v191_v1, %v29_v0  ;;  %v39_v4 = vmul.f32 %v191_v1, %v30_v2  ;;  %v50_v8 = vand.u32 127, %v49_v7  ;;  %v52_v9 = vshrl.u32 %v49_v7, 7  ;;  %199 = vset.pattern.permute.xlu0 %v281_v17  ;;  %198 = vset.pattern.permute.xlu1 %v281_v17  ;;  %s178_s1 = sshll.u32 %s282_s0, 4  ;;  %s179_s1 = int_to_ptr.vmem [resolvable:$true] %s178_s1 }
  0x17   :  { %s228_s28 = scalar_lea.vmem %s179_s1, 32  ;;  %p233_p9 = scmp.lt.s32.totalorder %s179_s1, %s179_s1 }
  0x18   :  { %v41_v5 = vsel %vm40_vm0, %v38_v3, 0.0  ;;  %v44_v6 = vsel %vm40_vm0, %v39_v4, 0.0  ;;  %v53_v11 = vsub.s32 %v50_v8, %v52_v9  ;;  %v69_v18 = vsub.s32 0, %v52_v9  ;;  %p229_p8 = scmp.ne.s32.totalorder %s179_s1, %s228_s28  ;;  %p234_p10 = scmp.lt.s32.totalorder %s228_s28, %s228_s28 }
  0x19   :  { %42 = vadd.xlane.f32.xlu0 %v41_v5  ;;  %v73_v19 = vsub.s32 1, %v52_v9 }
  0x1a   :  { %p235_p11 = por %p234_p10, %p233_p9 }
  0x1c   :  { %p236_p12 = pnand %p235_p11, %p229_p8 }
  0x1d   :  { %45 = vadd.xlane.f32.xlu0 %v44_v6 }
  0xa6   :  { %v43_v10 = vpop.xlane.xlu0 %42 }
  0xa7   :  { %v54_v13 = vrot.slane %v43_v10, %v53_v11 }
  0xaa   :  { %v46_v12 = vpop.xlane.xlu0 %45 }
  0xab   :  { %v58_v14 = vrot.slane %v46_v12, %v53_v11 }
  0xad   :  { %v60_v15 = vsel %vm59_vm1, %v58_v14, %v54_v13 }
  0xae   :  { %v63_v16 = vsel %vm62_vm2, %v60_v15, -inf }
  0xaf   :  { %64 = vmax.xlane.f32.xlu1 %v63_v16 }
 0x13c   :  { %v65_v20 = vpop.xlane.xlu1 %64 }
 0x13d   :  { %v70_v21 = vrot.slane %v65_v20, %v69_v18  ;;  %v74_v22 = vrot.slane %v65_v20, %v73_v19 }
 0x13f   :  { %v77_v23 = vsub.f32 %v43_v10, %v70_v21  ;;  %v78_v24 = vsub.f32 %v46_v12, %v74_v22 }
 0x141   :  { %v79_v25 = vmul.f32 1.442695, %v77_v23  ;;  %v81_v26 = vmul.f32 1.442695, %v78_v24 }
 0x143   :  { %200 = vpow2.f32 %v79_v25 }
 0x144   :  { %202 = vpow2.f32 %v81_v26 }
 0x14d   :  { %v201_v27 = vpop.eup %200 }
 0x14e   :  { %v203_v28 = vpop.eup %202  ;;  %86 = vperm.xlu1 %198, %v201_v27  }
 0x14f   :  { %89 = vperm.xlu0 %199, %v203_v28  }
 0x1cd   :  { %v87_v29 = vpop.permute.xlu1 %86 }
 0x1ce   :  { %v90_v30 = vpop.permute.xlu0 %89  ;;  %v94_v31 = vrot.slane %v87_v29, %v53_v11 }
 0x1cf   :  { %v98_v32 = vrot.slane %v90_v30, %v53_v11 }
 0x1d1   :  { %v99_v33 = vsel %vm59_vm1, %v98_v32, %v94_v31 }
 0x1d2   :  { %v101_v34 = vsel %vm62_vm2, %v99_v33, 0.0 }
 0x1d3   :  { %102 = vadd.xlane.f32.xlu1 %v101_v34 }
 0x260   :  { %v103_v35 = vpop.xlane.xlu1 %102 }
 0x261   :  { %204 = vrcp.f32 %v103_v35 }
 0x26b   :  { %v205_v36 = vpop.eup %204 }
 0x26c   :  { %v110_v37 = vrot.slane %v205_v36, %v69_v18  ;;  %v114_v39 = vrot.slane %v205_v36, %v73_v19 }
 0x26e   :  { %v117_v38 = vmul.f32 %v201_v27, %v110_v37  ;;  %v118_v40 = vmul.f32 %v203_v28, %v114_v39 }
 0x270   :  { %121 = vperm.xlu0 %199, %v117_v38  }
 0x274   :  { %126 = vperm.xlu0 %199, %v118_v40  }
 0x2ef   :  { %v122_v41 = vpop.permute.xlu0 %121 }
 0x2f0   :  { %v129_v42 = vmul.f32 %v122_v41, %v29_v0  ;;  %v148_v46 = vrot.slane %v122_v41, %v53_v11 }
 0x2f2   :  { %v131_v43 = vsel %vm40_vm0, %v129_v42, 0.0 }
 0x2f3   :  { %v132_v44 = vrot.slane %v131_v43, 4  ;;  %v127_v45 = vpop.permute.xlu0 %126 }
 0x2f4   :  { %v130_v47 = vmul.f32 %v127_v45, %v30_v2  ;;  %v152_v48 = vrot.slane %v127_v45, %v53_v11 }
 0x2f5   :  { %v133_v49 = vadd.f32 %v132_v44, %v131_v43 }
 0x2f6   :  { %v138_v50 = vsel %vm40_vm0, %v130_v47, 0.0  ;;  %v153_v51 = vsel %vm59_vm1, %v152_v48, %v148_v46 }
 0x2f7   :  { %v134_v52 = vrot.slane %v133_v49, 2  ;;  %v139_v53 = vrot.slane %v138_v50, 4  ;;  %155 = vst.msk [vmem:[#allocation6] sm:$0x3] %vm62_vm2, %v153_v51 }
 0x2f8   :  { %239 = shalt.err (!%p236_p12)
}
 0x2f9   :  { %s240_s4 = scalar_lea.hbm %s357_s3, 32 }
 0x2fa   :  { %p241_p13 = scmp.ne.s32.totalorder %s357_s3, %s240_s4  ;;  %p244_p0 = scmp.lt.u32.totalorder %s240_s4, %s357_s3 }
 0x2fc   :  { %p246_p1 = pnand %p244_p0, %p241_p13 }
 0x2fe   :  { %249 = shalt.err (!%p246_p1)
}
 0x2ff   :  { %181 = dma.vmem_to_hbm [thread:$0]  %s179_s1, 32, %s357_s3, [#allocation7]   ;;  %v135_v54 = vadd.f32 %v134_v52, %v133_v49  ;;  %v140_v55 = vadd.f32 %v139_v53, %v138_v50  ;;  %vm160_vm3 = vcmask 254976  }
 0x300   :  { %s283_s11 = smov [#allocation5]  }
 0x301   :  { %v141_v56 = vrot.slane %v140_v55, 2  ;;  %v136_v57 = vrot.slane %v135_v54, 1  ;;  %s168_s12 = sshll.u32 %s283_s11, 4  ;;  %s169_s12 = int_to_ptr.vmem [resolvable:$true] %s168_s12 }
 0x302   :  { %s250_s13 = scalar_lea.vmem %s169_s12, 32  ;;  %p255_p3 = scmp.lt.s32.totalorder %s169_s12, %s169_s12 }
 0x303   :  { %v142_v58 = vadd.f32 %v141_v56, %v140_v55  ;;  %v137_v61 = vadd.f32 %v136_v57, %v135_v54  ;;  %p251_p2 = scmp.ne.s32.totalorder %s169_s12, %s250_s13  ;;  %p256_p4 = scmp.lt.s32.totalorder %s250_s13, %s250_s13 }
 0x305   :  { %v143_v59 = vrot.slane %v142_v58, 1  ;;  %p257_p5 = por %p256_p4, %p255_p3 }
 0x307   :  { %v144_v60 = vadd.f32 %v143_v59, %v142_v58  ;;  %p258_p6 = pnand %p257_p5, %p251_p2 }
 0x309   :  { %v158_v62 = vsel %vm59_vm1, %v144_v60, %v137_v61 }
 0x30a   :  { %161 = vst.msk [vmem:[#allocation5] sm:$0x3] %vm160_vm3, %v158_v62 }
 0x30b   :  { %261 = shalt.err (!%p258_p6)
}
 0x30c   :  { %s262_s15 = scalar_lea.hbm %s356_s2, 32 }
 0x30d   :  { %p263_p7 = scmp.ne.s32.totalorder %s356_s2, %s262_s15  ;;  %p266_p8 = scmp.lt.u32.totalorder %s262_s15, %s356_s2 }
 0x30f   :  { %p268_p9 = pnand %p266_p8, %p263_p7 }
 0x311   :  { %271 = shalt.err (!%p268_p9)
}
 0x312   :  { %171 = dma.vmem_to_hbm [thread:$0]  %s169_s12, 32, %s356_s2, [#allocation4]  }
 0x313   :  { %274 = dma.done.wait [#allocation4], 32  }
 0x314   :  { %275 = vsyncadd [#allocation4], 4294967264 }
 0x315   :  { %276 = dma.done.wait [#allocation7], 32  }
 0x316   :  { %277 = vsyncadd [#allocation7], 4294967264 }
 0x317   :  { %188 = vsyncpa [#allocation3], 1 }
 0x318   :  { %189 = vsyncpa [#allocation4], 1 }
 0x319   :  { %190 = vsyncpa [#allocation7], 1 }

</bundles_post_ra>
